<compile_context>
chip_gen: v5e
topology: v5e:2x2
jax: 0.10.0
libtpu: 0.0.40
codegen_flags: <defaults>
</compile_context>

<pallas_src>
import jax
import jax.numpy as jnp
from jax.experimental import pallas as pl
from jax.experimental.pallas import tpu as pltpu


def ann_kernel(x_ref, w1_ref, b1_ref, w2_ref, b2_ref, w3_ref, b3_ref, o_ref):
    # x tile: (30, TB) feature-major. bf16 preferred upstream; cast is a no-op then.
    x = x_ref[...].astype(jnp.bfloat16)

    # fc1: (64, 30) @ (30, TB) -> (64, TB), f32 accumulation; (64, 1) bias broadcasts over lanes.
    h1 = jnp.dot(w1_ref[...], x, preferred_element_type=jnp.float32) + b1_ref[...]
    h1 = jnp.maximum(h1, 0.0).astype(jnp.bfloat16)

    # dropout(p=0.1): identity at inference.

    # fc2: (64, 64) @ (64, TB) -> (64, TB)
    h2 = jnp.dot(w2_ref[...], h1, preferred_element_type=jnp.float32) + b2_ref[...]
    h2 = jnp.maximum(h2, 0.0).astype(jnp.bfloat16)

    # dropout(p=0.1): identity at inference.

    # fc3 (logits): (2, 64) @ (64, TB) -> (2, TB); lane-dense store.
    out = jnp.dot(w3_ref[...], h2, preferred_element_type=jnp.float32) + b3_ref[...]
    o_ref[...] = out.astype(o_ref.dtype)


def ann_forward(x_fm, params, *, max_tile=8192):
    """Run the ANN forward pass.

    x_fm: feature-major input, shape (30, B). Pass bf16 upstream if possible (halves the
          dominant HBM read); f32 is accepted and cast in-register as a fallback.
    params: w1 (64,30), w2 (64,64), w3 (2,64) in PyTorch (out, in) layout;
            b1 (64,1), b2 (64,1), b3 (2,1).
    Returns (B, 2) float32 logits.
    """
    assert max_tile % 128 == 0, "max_tile must be a multiple of 128 (lane width)"

    # Weights to bf16 once (tiny, VMEM-resident); biases stay f32.
    w1 = params["w1"].astype(jnp.bfloat16)
    w2 = params["w2"].astype(jnp.bfloat16)
    w3 = params["w3"].astype(jnp.bfloat16)
    b1 = params["b1"].astype(jnp.float32)
    b2 = params["b2"].astype(jnp.float32)
    b3 = params["b3"].astype(jnp.float32)

    K, B = x_fm.shape
    N_out = w3.shape[0]

    # Batch tile on the lane axis. For small batches the block spans the full batch dim
    # (satisfying the (8,128) rule via "equals full dim"); otherwise TB is a multiple of 128
    # and Pallas masks the ragged last block (no wrapper-side pad needed).
    TB = B if B <= max_tile else max_tile
    n_tiles = pl.cdiv(B, TB)

    act_spec = pl.BlockSpec((K, TB), lambda i: (0, i))
    out_spec = pl.BlockSpec((N_out, TB), lambda i: (0, i))
    # Constant block index -> weights/biases DMA'd once, resident across all grid steps.
    resident = lambda a: pl.BlockSpec(a.shape, lambda i: (0, 0))

    out_t = pl.pallas_call(
        ann_kernel,
        out_shape=jax.ShapeDtypeStruct((N_out, B), jnp.float32),
        grid=(n_tiles,),
        in_specs=[
            act_spec,
            resident(w1), resident(b1),
            resident(w2), resident(b2),
            resident(w3), resident(b3),
        ],
        out_specs=out_spec,
        compiler_params=pltpu.CompilerParams(dimension_semantics=("parallel",)),
    )(x_fm, w1, b1, w2, b2, w3, b3)

    # Present the logits back in the conventional (B, 2) layout (tiny: 8 bytes/row).
    return out_t.T


def init_params(key):
    """Deterministic init mimicking PyTorch nn.Linear default (uniform +/- 1/sqrt(fan_in)).

    Weights stored in PyTorch's native (out, in) layout; biases as (out, 1) columns.
    """
    dims = [(30, 64), (64, 64), (64, 2)]
    params = {}
    for idx, (fan_in, fan_out) in enumerate(dims, start=1):
        key, kw, kb = jax.random.split(key, 3)
        bound = 1.0 / (fan_in ** 0.5)
        params[f"w{idx}"] = jax.random.uniform(
            kw, (fan_out, fan_in), jnp.float32, minval=-bound, maxval=bound)
        params[f"b{idx}"] = jax.random.uniform(
            kb, (fan_out, 1), jnp.float32, minval=-bound, maxval=bound)
    return params


def ann_reference(x, params):
    """Pure-JAX reference, dtype-matched to the kernel (bf16 MXU operands, f32 accum).

    x: (B, 30) row-major.
    """
    w1 = params["w1"].astype(jnp.bfloat16)
    w2 = params["w2"].astype(jnp.bfloat16)
    w3 = params["w3"].astype(jnp.bfloat16)
    xb = x.astype(jnp.bfloat16)
    h1 = jnp.maximum(
        jnp.dot(xb, w1.T, preferred_element_type=jnp.float32) + params["b1"].T, 0.0
    ).astype(jnp.bfloat16)
    h2 = jnp.maximum(
        jnp.dot(h1, w2.T, preferred_element_type=jnp.float32) + params["b2"].T, 0.0
    ).astype(jnp.bfloat16)
    return jnp.dot(h2, w3.T, preferred_element_type=jnp.float32) + params["b3"].T


def ann_reference_f32(x, params):
    """Full-f32 reference (matches the PyTorch model's inference numerics)."""
    h1 = jnp.maximum(x @ params["w1"].T + params["b1"].T, 0.0)
    h2 = jnp.maximum(h1 @ params["w2"].T + params["b2"].T, 0.0)
    return h2 @ params["w3"].T + params["b3"].T


if __name__ == "__main__":
    key = jax.random.PRNGKey(0)
    key, kx = jax.random.split(key)
    batch = 8
    x = jax.random.normal(kx, (batch, 30), jnp.float32)

    params = init_params(key)

    # Upstream contract: feature-major (30, B) bf16 input (lane-dense blocks, half the
    # HBM read bytes). The demo converts once here, outside the kernel.
    x_fm = x.T.astype(jnp.bfloat16)

    out = ann_forward(x_fm, params)
    out = jax.block_until_ready(out)
    assert out.shape == (batch, 2), out.shape

    # Dtype-matched reference (same bf16-operand / f32-accum strategy as the kernel).
    ref = ann_reference(x, params)
    assert jnp.allclose(out, ref, atol=1e-2, rtol=1e-2), "mismatch vs dtype-matched reference"

    # Full-f32 reference (PyTorch-equivalent numerics); loose tolerance covers bf16 drift.
    ref32 = ann_reference_f32(x, params)
    assert jnp.allclose(out, ref32, atol=7e-2, rtol=7e-2), "mismatch vs f32 reference"

    print("KERNEL_OK")
</pallas_src>

<mosaic_0001>
module attributes {stable_mosaic.version = 11 : i64} {
  func.func @ann_kernel(%arg0: i32, %arg1: memref<30x8xbf16, #tpu.memory_space<vmem>>, %arg2: memref<64x30xbf16, #tpu.memory_space<vmem>>, %arg3: memref<64x1xf32, #tpu.memory_space<vmem>>, %arg4: memref<64x64xbf16, #tpu.memory_space<vmem>>, %arg5: memref<64x1xf32, #tpu.memory_space<vmem>>, %arg6: memref<2x64xbf16, #tpu.memory_space<vmem>>, %arg7: memref<2x1xf32, #tpu.memory_space<vmem>>, %arg8: memref<2x8xf32, #tpu.memory_space<vmem>>) attributes {dimension_semantics = [#tpu.dimension_semantics<parallel>], iteration_bounds = array<i64: 1>, scalar_prefetch = 0 : i64, scratch_operands = 0 : i64, tpu.core_type = #tpu.core_type<tc>, window_params = [{transform_indices = @transform_0, window_bounds = array<i64: 30, 8>}, {pipeline_mode = #tpu.pipeline_mode<synchronous>, transform_indices = @transform_1, window_bounds = array<i64: 64, 30>}, {pipeline_mode = #tpu.pipeline_mode<synchronous>, transform_indices = @transform_2, window_bounds = array<i64: 64, 1>}, {pipeline_mode = #tpu.pipeline_mode<synchronous>, transform_indices = @transform_3, window_bounds = array<i64: 64, 64>}, {pipeline_mode = #tpu.pipeline_mode<synchronous>, transform_indices = @transform_4, window_bounds = array<i64: 64, 1>}, {pipeline_mode = #tpu.pipeline_mode<synchronous>, transform_indices = @transform_5, window_bounds = array<i64: 2, 64>}, {pipeline_mode = #tpu.pipeline_mode<synchronous>, transform_indices = @transform_6, window_bounds = array<i64: 2, 1>}, {transform_indices = @transform_7, window_bounds = array<i64: 2, 8>}]} {
    %c0 = arith.constant 0 : index
    %c0_0 = arith.constant 0 : index
    %0 = vector.load %arg1[%c0, %c0_0] : memref<30x8xbf16, #tpu.memory_space<vmem>>, vector<30x8xbf16>
    %c0_1 = arith.constant 0 : index
    %c0_2 = arith.constant 0 : index
    %1 = vector.load %arg2[%c0_1, %c0_2] : memref<64x30xbf16, #tpu.memory_space<vmem>>, vector<64x30xbf16>
    %cst = arith.constant dense<0.000000e+00> : vector<64x8xf32>
    %2 = tpu.matmul %1, %0, %cst {dimension_numbers = #tpu.dot_dimension_numbers<[1], [0], [0], [1], [0, 0, 1, 1], [], []>} : vector<64x30xbf16>, vector<30x8xbf16>, vector<64x8xf32> -> vector<64x8xf32>
    %c0_3 = arith.constant 0 : index
    %c0_4 = arith.constant 0 : index
    %3 = vector.load %arg3[%c0_3, %c0_4] : memref<64x1xf32, #tpu.memory_space<vmem>>, vector<64x1xf32>
    %4 = vector.broadcast %3 : vector<64x1xf32> to vector<64x8xf32>
    %5 = arith.addf %2, %4 : vector<64x8xf32>
    %cst_5 = arith.constant 0.000000e+00 : f32
    %6 = vector.broadcast %cst_5 : f32 to vector<64x8xf32>
    %7 = arith.maximumf %5, %6 : vector<64x8xf32>
    %8 = arith.truncf %7 : vector<64x8xf32> to vector<64x8xbf16>
    %c0_6 = arith.constant 0 : index
    %c0_7 = arith.constant 0 : index
    %9 = vector.load %arg4[%c0_6, %c0_7] : memref<64x64xbf16, #tpu.memory_space<vmem>>, vector<64x64xbf16>
    %cst_8 = arith.constant dense<0.000000e+00> : vector<64x8xf32>
    %10 = tpu.matmul %9, %8, %cst_8 {dimension_numbers = #tpu.dot_dimension_numbers<[1], [0], [0], [1], [0, 0, 1, 1], [], []>} : vector<64x64xbf16>, vector<64x8xbf16>, vector<64x8xf32> -> vector<64x8xf32>
    %c0_9 = arith.constant 0 : index
    %c0_10 = arith.constant 0 : index
    %11 = vector.load %arg5[%c0_9, %c0_10] : memref<64x1xf32, #tpu.memory_space<vmem>>, vector<64x1xf32>
    %12 = vector.broadcast %11 : vector<64x1xf32> to vector<64x8xf32>
    %13 = arith.addf %10, %12 : vector<64x8xf32>
    %cst_11 = arith.constant 0.000000e+00 : f32
    %14 = vector.broadcast %cst_11 : f32 to vector<64x8xf32>
    %15 = arith.maximumf %13, %14 : vector<64x8xf32>
    %16 = arith.truncf %15 : vector<64x8xf32> to vector<64x8xbf16>
    %c0_12 = arith.constant 0 : index
    %c0_13 = arith.constant 0 : index
    %17 = vector.load %arg6[%c0_12, %c0_13] : memref<2x64xbf16, #tpu.memory_space<vmem>>, vector<2x64xbf16>
    %cst_14 = arith.constant dense<0.000000e+00> : vector<2x8xf32>
    %18 = tpu.matmul %17, %16, %cst_14 {dimension_numbers = #tpu.dot_dimension_numbers<[1], [0], [0], [1], [0, 0, 1, 1], [], []>} : vector<2x64xbf16>, vector<64x8xbf16>, vector<2x8xf32> -> vector<2x8xf32>
    %c0_15 = arith.constant 0 : index
    %c0_16 = arith.constant 0 : index
    %19 = vector.load %arg7[%c0_15, %c0_16] : memref<2x1xf32, #tpu.memory_space<vmem>>, vector<2x1xf32>
    %20 = vector.broadcast %19 : vector<2x1xf32> to vector<2x8xf32>
    %21 = arith.addf %18, %20 : vector<2x8xf32>
    %c0_17 = arith.constant 0 : index
    %c0_18 = arith.constant 0 : index
    %22 = vector.load %arg8[%c0_17, %c0_18] : memref<2x8xf32, #tpu.memory_space<vmem>>, vector<2x8xf32>
    tpu.vector_store %arg8[%c0_17, %c0_18], %21 {strides = array<i32>} : memref<2x8xf32, #tpu.memory_space<vmem>>, vector<2x8xf32>,
    return
  }
  func.func @transform_0(%arg0: i32) -> (i32, i32) {
    %c0_i32 = arith.constant 0 : i32
    %c0_i32_0 = arith.constant 0 : i32
    return %c0_i32, %arg0 : i32, i32
  }
  func.func @transform_1(%arg0: i32) -> (i32, i32) {
    %c0_i32 = arith.constant 0 : i32
    %c0_i32_0 = arith.constant 0 : i32
    %c0_i32_1 = arith.constant 0 : i32
    return %c0_i32, %c0_i32_0 : i32, i32
  }
  func.func @transform_2(%arg0: i32) -> (i32, i32) {
    %c0_i32 = arith.constant 0 : i32
    %c0_i32_0 = arith.constant 0 : i32
    %c0_i32_1 = arith.constant 0 : i32
    return %c0_i32, %c0_i32_0 : i32, i32
  }
  func.func @transform_3(%arg0: i32) -> (i32, i32) {
    %c0_i32 = arith.constant 0 : i32
    %c0_i32_0 = arith.constant 0 : i32
    %c0_i32_1 = arith.constant 0 : i32
    return %c0_i32, %c0_i32_0 : i32, i32
  }
  func.func @transform_4(%arg0: i32) -> (i32, i32) {
    %c0_i32 = arith.constant 0 : i32
    %c0_i32_0 = arith.constant 0 : i32
    %c0_i32_1 = arith.constant 0 : i32
    return %c0_i32, %c0_i32_0 : i32, i32
  }
  func.func @transform_5(%arg0: i32) -> (i32, i32) {
    %c0_i32 = arith.constant 0 : i32
    %c0_i32_0 = arith.constant 0 : i32
    %c0_i32_1 = arith.constant 0 : i32
    return %c0_i32, %c0_i32_0 : i32, i32
  }
  func.func @transform_6(%arg0: i32) -> (i32, i32) {
    %c0_i32 = arith.constant 0 : i32
    %c0_i32_0 = arith.constant 0 : i32
    %c0_i32_1 = arith.constant 0 : i32
    return %c0_i32, %c0_i32_0 : i32, i32
  }
  func.func @transform_7(%arg0: i32) -> (i32, i32) {
    %c0_i32 = arith.constant 0 : i32
    %c0_i32_0 = arith.constant 0 : i32
    return %c0_i32, %arg0 : i32, i32
  }
}

</mosaic_0001>

<bundles_post_ra>
// kernel: tpu_custom_call.1
= control target key start
LH: loop header
LB: loop body
LE: loop exit
PB: predicated region body
PF: predicated region fallthrough
CT: control target
= control target key end

     0   :  { %vm132_vm0 = vcmask 1046528   ;;  %v448_v3 = vmov 0   ;;  %s589_s0 = inlined_call_operand.vmem [shape: bf16[30,8], index: 0, kind: input, shape index: {}]   ;;  %s590_s1 = inlined_call_operand.vmem [shape: bf16[64,30], index: 1, kind: input, shape index: {}]   ;;  %s591_s2 = inlined_call_operand.vmem [shape: f32[64,1], index: 2, kind: input, shape index: {}]   ;;  %s592_s3 = inlined_call_operand.vmem [shape: bf16[64,64], index: 3, kind: input, shape index: {}]   ;;  %s593_s4 = inlined_call_operand.vmem [shape: f32[64,1], index: 4, kind: input, shape index: {}]   ;;  %s594_s5 = inlined_call_operand.vmem [shape: bf16[2,64], index: 5, kind: input, shape index: {}]   ;;  %s595_s6 = inlined_call_operand.vmem [shape: f32[2,1], index: 6, kind: input, shape index: {}]   ;;  %s596_s7 = inlined_call_operand.hbm [shape: f32[2,8], index: 7, kind: output, shape index: {}]  }
   0x1   :  { %v370_v0 = vld [vmem:[%s589_s0 + $0x8] sm:$0xf]  ;;  %v398_v1 = vld [vmem:[%s589_s0 + $0x8] sm:$0x70]  ;;  %419 = vset.pattern.permute.xlu0 %v448_v3  ;;  %v46_v4 = vld [vmem:[%s591_s2 + $0x30] sm:$0xff]  ;;  %420 = vset.pattern.permute.xlu1 %v448_v3 }
   0x2   :  { %v371_v2 = vor.u32 %v398_v1, %v370_v0  ;;  %80 = vperm.xlu0 %419, %v46_v4   ;;  %v44_v5 = vld [vmem:[%s591_s2 + $0x20] sm:$0xff]  ;;  %421 = vset.pattern.permute.xlu2 %v448_v3 }
   0x3   :  { %70 = vperm.xlu1 %420, %v44_v5   ;;  %v397_v7 = vld [vmem:[%s589_s0] sm:$0xff] }
   0x4   :  { %v134_v6 = vsel %vm132_vm0, %v371_v2, 0 }
   0x5   :  { %142 = vmatpush.bf16.msra.mxu0 %v134_v6  ;;  %407 = vmatpush.bf16.msra.mxu1 %v134_v6 }
   0x6   :  { %12 = vsyncpa [#allocation3], 0  ;;  %v399_v8 = vld [vmem:[%s590_s1] sm:$0xff]  ;;  %v47_v9 = vld [vmem:[%s591_s2 + $0x38] sm:$0xff]  ;;  %vm119_vm1 = vcmask 244736   ;;  %vm253_vm2 = vcmask 523264  }
   0x7   :  { %v45_v10 = vld [vmem:[%s591_s2 + $0x28] sm:$0xff]  ;;  %v402_v11 = vld [vmem:[%s590_s1 + $0x18] sm:$0xff]  ;;  %v42_v12 = vld [vmem:[%s591_s2 + $0x10] sm:$0xff]  ;;  %s449_s29 = smov [#allocation2]   ;;  %s339_s10 = sshll.u32 %s596_s7, 4  ;;  %vm330_vm3 = vcmask 58368   ;;  %s340_s10 = int_to_ptr.hbm [resolvable:$true] %s339_s10 }
   0x8   :  { %60 = vperm.xlu2 %421, %v42_v12   ;;  %v40_v13 = vld [vmem:[%s591_s2] sm:$0xff]  ;;  %v41_v14 = vld [vmem:[%s591_s2 + $0x8] sm:$0xff]  ;;  %v43_v15 = vld [vmem:[%s591_s2 + $0x18] sm:$0xff]  ;;  %s337_s30 = sshll.u32 %s449_s29, 4  ;;  %s338_s30 = int_to_ptr.vmem [resolvable:$true] %s337_s30 }
   0x9   :  { %143 = vmatpush.bf16.msra.mxu0 %v397_v7  ;;  %408 = vmatpush.bf16.msra.mxu1 %v397_v7  ;;  %v400_v16 = vld [vmem:[%s590_s1 + $0x8] sm:$0xff]  ;;  %v192_v17 = vld [vmem:[%s593_s4 + $0x38] sm:$0xff]  ;;  %v189_v18 = vld [vmem:[%s593_s4 + $0x20] sm:$0xff] }
   0xa   :  { %85 = vperm.xlu0 %419, %v47_v9   ;;  %v191_v19 = vld [vmem:[%s593_s4 + $0x30] sm:$0xff]  ;;  %v188_v21 = vld [vmem:[%s593_s4 + $0x18] sm:$0xff]  ;;  %v190_v22 = vld [vmem:[%s593_s4 + $0x28] sm:$0xff] }
   0xb   :  { %75 = vperm.xlu1 %420, %v45_v10   ;;  %v187_v20 = vld [vmem:[%s593_s4 + $0x10] sm:$0xff]  ;;  %v186_v24 = vld [vmem:[%s593_s4 + $0x8] sm:$0xff]  ;;  %v308_v25 = vld [vmem:[%s595_s6] sm:$0x3] }
   0xc   :  { %372 = vmatmul.msk.bf16.vlgmr.msra.gmra.mxu0 %vm119_vm1, %v399_v8  ;;  %375 = vmatmul.msk.bf16.vlgmr.msra.gmra.mxu1 %vm119_vm1, %v402_v11  ;;  %v401_v23 = vld [vmem:[%s590_s1 + $0x10] sm:$0xff]  ;;  %v185_v26 = vld [vmem:[%s593_s4] sm:$0xff]  ;;  %v404_v0 = vld [vmem:[%s592_s3 + $0x8] sm:$0xff] }
   0xd   :  { %v403_v63 = vld [vmem:[%s592_s3] sm:$0xff]  ;;  %v405_v1 = vld [vmem:[%s592_s3 + $0x10] sm:$0xff]  ;;  %v406_v2 = vld [vmem:[%s592_s3 + $0x18] sm:$0xff] }
  0x10   :  { %65 = vperm.xlu2 %421, %v43_v15  }
  0x12   :  { %50 = vperm.xlu0 %419, %v40_v13  }
  0x13   :  { %55 = vperm.xlu1 %420, %v41_v14  }
  0x18   :  { %225 = vperm.xlu2 %421, %v191_v19  }
  0x1a   :  { %230 = vperm.xlu0 %419, %v192_v17  }
  0x1b   :  { %215 = vperm.xlu1 %420, %v189_v18  }
  0x1c   :  { %373 = vmatmul.msk.bf16.gmra.mxu0 %vm119_vm1, %v400_v16 }
  0x20   :  { %220 = vperm.xlu2 %421, %v190_v22  }
  0x22   :  { %205 = vperm.xlu0 %419, %v187_v20  }
  0x23   :  { %210 = vperm.xlu1 %420, %v188_v21  }
  0x28   :  { %195 = vperm.xlu2 %421, %v185_v26  }
  0x2a   :  { %200 = vperm.xlu0 %419, %v186_v24  }
  0x2b   :  { %311 = vperm.xlu1 %420, %v308_v25  }
  0x2c   :  { %374 = vmatmul.msk.bf16.gmra.mxu0 %vm119_vm1, %v401_v23 }
  0x62   :  { %v61_v41 = vpop.permute.xlu2 %60 }
  0x6a   :  { %v66_v45 = vpop.permute.xlu2 %65 }
  0x72   :  { %v226_v6 = vpop.permute.xlu2 %225 }
  0x74   :  { %v81_v27 = vpop.permute.xlu0 %80 }
  0x75   :  { %v71_v39 = vpop.permute.xlu1 %70 }
  0x7a   :  { %v221_v13 = vpop.permute.xlu2 %220 }
  0x7c   :  { %v86_v32 = vpop.permute.xlu0 %85 }
  0x7d   :  { %v76_v42 = vpop.permute.xlu1 %75 }
  0x84   :  { %v51_v53 = vpop.permute.xlu0 %50 }
  0x85   :  { %v56_v49 = vpop.permute.xlu1 %55 }
  0x89   :  { %v145_v28 = vpop.f32.mrf.mxu0  ;;  %v160_v29 = vpop.f32.mrf.mxu1 }
  0x8a   :  { %v161_v30 = vadd.f32 %v160_v29, %v81_v27  ;;  %v146_v57 = vadd.f32 %v145_v28, %v51_v53 }
  0x8c   :  { %v171_v34 = vmax.f32 %v161_v30, 0.0  ;;  %v165_v61 = vmax.f32 %v146_v57, 0.0  ;;  %v231_v5 = vpop.permute.xlu0 %230 }
  0x8d   :  { %v216_v9 = vpop.permute.xlu1 %215 }
  0x91   :  { %v147_v31 = vpop.f32.mrf.mxu0  ;;  %v162_v33 = vpop.f32.mrf.mxu1 }
  0x92   :  { %v163_v35 = vadd.f32 %v162_v33, %v86_v32  ;;  %v148_v54 = vadd.f32 %v147_v31, %v56_v49  ;;  %v196_v32 = vpop.permute.xlu2 %195 }
  0x94   :  { %v172_v36 = vmax.f32 %v163_v35, 0.0  ;;  %v166_v59 = vmax.f32 %v148_v54, 0.0  ;;  %v206_v11 = vpop.permute.xlu0 %205 }
  0x95   :  { %v211_v21 = vpop.permute.xlu1 %210 }
  0x96   :  { %v176_v37 = vpack.c.bf16 %v172_v36, %v171_v34  ;;  %v173_v62 = vpack.c.bf16 %v166_v59, %v165_v61 }
  0x98   :  { %270 = vmatpush.bf16.msrb.mxu1 %v176_v37  ;;  %409 = vmatpush.bf16.msra.mxu2 %v176_v37 }
  0x99   :  { %v150_v38 = vpop.f32.mrf.mxu0  ;;  %410 = vmatpush.bf16.msra.mxu3 %v176_v37 }
  0x9a   :  { %v151_v50 = vadd.f32 %v150_v38, %v61_v41 }
  0x9c   :  { %v167_v58 = vmax.f32 %v151_v50, 0.0  ;;  %v201_v28 = vpop.permute.xlu0 %200 }
  0xa1   :  { %v152_v40 = vpop.f32.mrf.mxu0 }
  0xa2   :  { %v153_v47 = vadd.f32 %v152_v40, %v66_v45  ;;  %v312_v40 = vpop.permute.xlu1 %311 }
  0xa4   :  { %v168_v55 = vmax.f32 %v153_v47, 0.0 }
  0xa6   :  { %v174_v60 = vpack.c.bf16 %v168_v55, %v167_v58 }
  0xa9   :  { %v155_v43 = vpop.f32.mrf.mxu0 }
  0xaa   :  { %v156_v44 = vadd.f32 %v155_v43, %v71_v39  ;;  %v307_v39 = vld [vmem:[%s594_s5] sm:$0x1] }
  0xac   :  { %v169_v51 = vmax.f32 %v156_v44, 0.0 }
  0xb1   :  { %v157_v46 = vpop.f32.mrf.mxu0 }
  0xb2   :  { %v158_v48 = vadd.f32 %v157_v46, %v76_v42 }
  0xb4   :  { %v170_v52 = vmax.f32 %v158_v48, 0.0 }
  0xb6   :  { %v175_v56 = vpack.c.bf16 %v170_v52, %v169_v51 }
  0xb8   :  { %271 = vmatpush.bf16.msrb.mxu1 %v175_v56  ;;  %411 = vmatpush.bf16.msra.mxu2 %v175_v56 }
  0xb9   :  { %412 = vmatpush.bf16.msra.mxu3 %v175_v56 }
  0xbc   :  { %272 = vmatpush.bf16.msrb.mxu1 %v174_v60  ;;  %413 = vmatpush.bf16.msra.mxu2 %v174_v60 }
  0xbd   :  { %414 = vmatpush.bf16.msra.mxu3 %v174_v60 }
  0xc0   :  { %273 = vmatpush.bf16.msrb.mxu1 %v173_v62  ;;  %415 = vmatpush.bf16.msra.mxu2 %v173_v62 }
  0xc1   :  { %416 = vmatpush.bf16.msra.mxu3 %v173_v62 }
  0xc3   :  { %392 = vmatmul.msk.bf16.vlgmr.msrb.gmra.mxu1 %vm253_vm2, %v403_v63  ;;  %393 = vmatmul.msk.bf16.vlgmr.msra.gmra.mxu2 %vm253_vm2, %v404_v0 }
  0xc4   :  { %394 = vmatmul.msk.bf16.vlgmr.msra.gmra.mxu3 %vm253_vm2, %v405_v1 }
  0xd4   :  { %395 = vmatmul.msk.bf16.gmra.mxu3 %vm253_vm2, %v406_v2 }
 0x140   :  { %v275_v10 = vpop.f32.mrf.mxu1 }
 0x141   :  { %v276_v33 = vadd.f32 %v275_v10, %v196_v32 }
 0x143   :  { %v295_v37 = vmax.f32 %v276_v33, 0.0 }
 0x146   :  { %v280_v7 = vpop.f32.mrf.mxu2 }
 0x147   :  { %v285_v3 = vpop.f32.mrf.mxu3  ;;  %v281_v26 = vadd.f32 %v280_v7, %v206_v11 }
 0x148   :  { %v286_v18 = vadd.f32 %v285_v3, %v216_v9  ;;  %v277_v25 = vpop.f32.mrf.mxu1 }
 0x149   :  { %v278_v29 = vadd.f32 %v277_v25, %v201_v28  ;;  %v297_v34 = vmax.f32 %v281_v26, 0.0 }
 0x14a   :  { %v299_v27 = vmax.f32 %v286_v18, 0.0 }
 0x14b   :  { %v296_v35 = vmax.f32 %v278_v29, 0.0 }
 0x14d   :  { %v303_v38 = vpack.c.bf16 %v296_v35, %v295_v37 }
 0x14e   :  { %v282_v17 = vpop.f32.mrf.mxu2 }
 0x14f   :  { %v287_v4 = vpop.f32.mrf.mxu3  ;;  %v283_v22 = vadd.f32 %v282_v17, %v211_v21 }
 0x150   :  { %v288_v15 = vadd.f32 %v287_v4, %v221_v13 }
 0x151   :  { %v298_v30 = vmax.f32 %v283_v22, 0.0 }
 0x152   :  { %v300_v23 = vmax.f32 %v288_v15, 0.0 }
 0x153   :  { %v304_v36 = vpack.c.bf16 %v298_v30, %v297_v34 }
 0x154   :  { %v305_v31 = vpack.c.bf16 %v300_v23, %v299_v27 }
 0x157   :  { %v290_v8 = vpop.f32.mrf.mxu3 }
 0x158   :  { %v291_v12 = vadd.f32 %v290_v8, %v226_v6 }
 0x15a   :  { %v301_v19 = vmax.f32 %v291_v12, 0.0 }
 0x15f   :  { %v292_v14 = vpop.f32.mrf.mxu3 }
 0x160   :  { %v293_v16 = vadd.f32 %v292_v14, %v231_v5 }
 0x162   :  { %v302_v20 = vmax.f32 %v293_v16, 0.0 }
 0x164   :  { %v306_v24 = vpack.c.bf16 %v302_v20, %v301_v19 }
 0x166   :  { %321 = vmatpush.bf16.msrb.mxu2 %v306_v24 }
 0x16a   :  { %322 = vmatpush.bf16.msrb.mxu2 %v305_v31 }
 0x16e   :  { %323 = vmatpush.bf16.msrb.mxu2 %v304_v36 }
 0x172   :  { %324 = vmatpush.bf16.msrb.mxu2 %v303_v38 }
 0x175   :  { %396 = vmatmul.msk.bf16.vlgmr.msrb.gmra.mxu2 %vm253_vm2, %v307_v39 }
 0x1f8   :  { %v326_v41 = vpop.f32.mrf.mxu2 }
 0x1f9   :  { %v327_v42 = vadd.f32 %v326_v41, %v312_v40 }
 0x1fb   :  { %331 = vst.msk [vmem:[#allocation2] sm:$0x3] %vm330_vm3, %v327_v42 }
 0x1fc   :  { %342 = dma.vmem_to_hbm [thread:$0]  %s338_s30, 32, %s340_s10, [#allocation3]  }
 0x200   :  { %v328_v43 = vpop.f32.mrf.mxu2 }
 0x201   :  { %446 = dma.done.wait [#allocation3], 32  }
 0x202   :  { %447 = vsyncadd [#allocation3], 4294967264 }
 0x203   :  { %347 = vsyncpa [#allocation3], 1 }

</bundles_post_ra>
